<compile_context>
chip_gen: v5e
topology: v5e:2x2
jax: 0.10.0
libtpu: 0.0.40
codegen_flags: <defaults>
</compile_context>

<pallas_src>
import jax
import jax.numpy as jnp
from jax.experimental import pallas as pl
from jax.experimental.pallas import tpu as pltpu


def _pos_token_kernel(packed_ref, w_ref, out_ref):
    # packed_ref : (TR, 3) int32  -> [:,0] = positions // group (flattened b*S+s)
    #                                [:,1] = tokens
    #                                [:,2] = per-row bias, f32 bits
    # w_ref      : (P, TV) float32   embedding table tile (vocab-tiled, resident
    #                                across the inner row grid axis)
    # out_ref    : (TR, TV) float32
    TR, TV = out_ref.shape
    P = w_ref.shape[0]

    packed = packed_ref[...]                                      # (TR, 3) int32
    pos = packed[:, 0:1]                                          # (TR, 1)
    tok = packed[:, 1:2]                                          # (TR, 1)
    bias = pltpu.bitcast(packed[:, 2:3], jnp.float32)             # (TR, 1)

    # Embedding gather on the MXU: one_hot(pos, P) @ W.
    p_iota = jax.lax.broadcasted_iota(jnp.int32, (TR, P), 1)
    pos_oh = (p_iota == pos).astype(jnp.float32)                  # (TR, P)
    pos_pred = jnp.dot(pos_oh, w_ref[...],
                       preferred_element_type=jnp.float32)        # (TR, TV)

    # Token contribution fused into a single select.  The vocab-tile offset is
    # shifted onto the (TR,1) token instead of the (TR,TV) iota (saves a
    # full-tile VPU add per step).
    masked_bias = jnp.where(tok != 0, bias, 0.0)                  # (TR, 1)
    tok_local = tok - pl.program_id(0) * TV                       # vocab axis is outer
    v_iota = jax.lax.broadcasted_iota(jnp.int32, (TR, TV), 1)
    out_ref[...] = pos_pred + jnp.where(v_iota == tok_local, masked_bias, 0.0)


def pos_token_forward(positions, tokens, pos_weight, token_pos_add, token_add,
                      position_group_size, *, row_tile=512, v_tile=1024):
    """positions, tokens: (B, S) int; pos_weight: (P, V); token_pos_add: (1, P, 1);
    token_add: (1,). Returns (B, S, V) float32."""
    B, S = positions.shape
    P, V = pos_weight.shape
    R = B * S

    # Host-side glue: leaky_relu(token_add) + repeat_interleave(token_pos_add)
    # folded into one per-row bias (row r = b*S + s -> bias of position s).
    ta = jax.nn.leaky_relu(token_add.reshape(()).astype(jnp.float32))  # slope 0.01
    tpa_full = jnp.repeat(token_pos_add[0, :, 0].astype(jnp.float32),
                          position_group_size)[:S]                     # (S,)
    bias_rows = jnp.tile(ta + tpa_full, B)                             # (R,)

    # Pre-divide positions by the group size on the host (cheap XLA fusion)
    # and pack [pos, tok, bias_bits] into a single (R, 3) int32 array.
    pos_rows = (positions.astype(jnp.int32) // position_group_size).reshape(R)
    tok_rows = tokens.reshape(R).astype(jnp.int32)
    bias_bits = jax.lax.bitcast_convert_type(bias_rows, jnp.int32)
    packed = jnp.stack([pos_rows, tok_rows, bias_bits], axis=1)        # (R, 3)

    # Row tiling: TR multiple of 8, rows padded to a multiple of TR.
    row_tile = max(8, (row_tile // 8) * 8)
    TR = min(row_tile, -(-R // 8) * 8)
    R_pad = -(-R // TR) * TR
    if R_pad != R:
        packed = jnp.pad(packed, ((0, R_pad - R), (0, 0)))  # pad rows: pos=0, tok=0

    # Vocab tiling: ALWAYS tile (never fall back to a full-V block); pad V up
    # to a multiple of the tile so output stores stay lane-dense.
    v_tile = max(128, (v_tile // 128) * 128)
    TV = min(v_tile, -(-V // 128) * 128)
    V_pad = -(-V // TV) * TV
    w = pos_weight.astype(jnp.float32)
    if V_pad != V:
        w = jnp.pad(w, ((0, 0), (0, V_pad - V)))

    # Grid: vocab OUTER, rows INNER -> weight tile resident across row tiles.
    grid = (V_pad // TV, R_pad // TR)

    # VMEM budget: 2x out tile (double buffer) + f32 matmul/select temps
    # + 2x W tile + 2x packed tile (lane-padded) + one-hot temp + headroom.
    out_tile_b = TR * TV * 4
    w_tile_b = P * TV * 4
    packed_tile_b = TR * 128 * 4
    vmem_est = (4 * out_tile_b + 2 * w_tile_b + 2 * packed_tile_b
                + TR * max(P, 128) * 4 + (2 << 20))
    vmem_limit = int(min(max(vmem_est, 16 << 20), 48 << 20))

    out = pl.pallas_call(
        _pos_token_kernel,
        out_shape=jax.ShapeDtypeStruct((R_pad, V_pad), jnp.float32),
        grid=grid,
        in_specs=[
            pl.BlockSpec((TR, 3), lambda j, i: (i, 0)),   # packed scalar rows
            pl.BlockSpec((P, TV), lambda j, i: (0, j)),   # W tile (constant over i)
        ],
        out_specs=pl.BlockSpec((TR, TV), lambda j, i: (i, j)),
        compiler_params=pltpu.CompilerParams(
            dimension_semantics=("parallel", "parallel"),
            vmem_limit_bytes=vmem_limit),
    )(packed, w)

    return out[:R, :V].reshape(B, S, V)


if __name__ == "__main__":
    # Small shapes consistent with the module.
    batch = 2
    seq_length = 16
    vocab_size = 128
    position_group_size = 2
    P = seq_length // position_group_size

    key = jax.random.PRNGKey(0)
    k_w, k_tpa, k_tok = jax.random.split(key, 3)

    # Deterministic parameter init mirroring the module's __init__:
    #   pos_model.weight ~ N(0, 0.02); token_pos_add ~ N(0, 0.005); token_add = 0.02
    pos_weight = 0.02 * jax.random.normal(k_w, (P, vocab_size), dtype=jnp.float32)
    token_pos_add = 0.005 * jax.random.normal(k_tpa, (1, P, 1), dtype=jnp.float32)
    token_add = jnp.full((1,), 0.02, dtype=jnp.float32)

    positions = jnp.tile(jnp.arange(seq_length, dtype=jnp.int32)[None, :], (batch, 1))
    tokens = jax.random.randint(k_tok, (batch, seq_length), 0, vocab_size,
                                dtype=jnp.int32)

    out = pos_token_forward(positions, tokens, pos_weight, token_pos_add,
                            token_add, position_group_size)
    out = jax.block_until_ready(out)

    # Pure-JAX reference of the PyTorch forward.
    pos_pred = pos_weight[positions // position_group_size]                  # (B,S,V)
    short_bias = jax.nn.leaky_relu(token_add) + token_pos_add                # (1,P,1)
    full_bias = jnp.repeat(short_bias, position_group_size, axis=1)[:, :seq_length]
    one_hot = jax.nn.one_hot(tokens, vocab_size, dtype=jnp.float32)
    ref = pos_pred + full_bias * one_hot * (tokens != 0)[..., None].astype(jnp.float32)

    assert out.shape == (batch, seq_length, vocab_size)
    assert jnp.allclose(out, ref, atol=1e-6), float(jnp.max(jnp.abs(out - ref)))
    print("KERNEL_OK")
</pallas_src>

<mosaic_0001>
module attributes {stable_mosaic.version = 11 : i64} {
  func.func @_pos_token_kernel(%arg0: i32, %arg1: i32, %arg2: memref<32x3xi32, #tpu.memory_space<vmem>>, %arg3: memref<8x128xf32, #tpu.memory_space<vmem>>, %arg4: memref<32x128xf32, #tpu.memory_space<vmem>>) attributes {dimension_semantics = [#tpu.dimension_semantics<parallel>, #tpu.dimension_semantics<parallel>], iteration_bounds = array<i64: 1, 1>, scalar_prefetch = 0 : i64, scratch_operands = 0 : i64, tpu.core_type = #tpu.core_type<tc>, window_params = [{transform_indices = @transform_0, window_bounds = array<i64: 32, 3>}, {transform_indices = @transform_1, window_bounds = array<i64: 8, 128>}, {transform_indices = @transform_2, window_bounds = array<i64: 32, 128>}]} {
    %c0 = arith.constant 0 : index
    %c0_0 = arith.constant 0 : index
    %0 = vector.load %arg2[%c0, %c0_0] : memref<32x3xi32, #tpu.memory_space<vmem>>, vector<32x3xi32>
    %1 = vector.extract_strided_slice %0 {offsets = [0, 0], sizes = [32, 1], strides = [1, 1]} : vector<32x3xi32> to vector<32x1xi32>
    %2 = vector.extract_strided_slice %0 {offsets = [0, 1], sizes = [32, 1], strides = [1, 1]} : vector<32x3xi32> to vector<32x1xi32>
    %3 = vector.extract_strided_slice %0 {offsets = [0, 2], sizes = [32, 1], strides = [1, 1]} : vector<32x3xi32> to vector<32x1xi32>
    %4 = tpu.bitcast %3 : vector<32x1xi32> -> vector<32x1xf32>
    %5 = tpu.iota {dimensions = array<i32: 1>} : vector<32x8xi32>
    %6 = vector.broadcast %1 : vector<32x1xi32> to vector<32x8xi32>
    %7 = arith.cmpi eq, %5, %6 : vector<32x8xi32>
    %8 = arith.extui %7 : vector<32x8xi1> to vector<32x8xi32>
    %9 = arith.sitofp %8 : vector<32x8xi32> to vector<32x8xf32>
    %c0_1 = arith.constant 0 : index
    %c0_2 = arith.constant 0 : index
    %10 = vector.load %arg3[%c0_1, %c0_2] : memref<8x128xf32, #tpu.memory_space<vmem>>, vector<8x128xf32>
    %cst = arith.constant dense<0.000000e+00> : vector<32x128xf32>
    %11 = tpu.matmul %9, %10, %cst {dimension_numbers = #tpu.dot_dimension_numbers<[1], [0], [0], [1], [0, 0, 1, 1], [], []>} : vector<32x8xf32>, vector<8x128xf32>, vector<32x128xf32> -> vector<32x128xf32>
    %c0_i32 = arith.constant 0 : i32
    %12 = vector.broadcast %c0_i32 : i32 to vector<32x1xi32>
    %13 = arith.cmpi ne, %2, %12 : vector<32x1xi32>
    %cst_3 = arith.constant 0.000000e+00 : f32
    %14 = vector.broadcast %cst_3 : f32 to vector<32x1xf32>
    %15 = arith.select %13, %4, %14 : vector<32x1xi1>, vector<32x1xf32>
    %c128_i32 = arith.constant 128 : i32
    %16 = arith.muli %arg0, %c128_i32 : i32
    %17 = vector.broadcast %16 : i32 to vector<32x1xi32>
    %18 = arith.subi %2, %17 : vector<32x1xi32>
    %19 = tpu.iota {dimensions = array<i32: 1>} : vector<32x128xi32>
    %20 = vector.broadcast %18 : vector<32x1xi32> to vector<32x128xi32>
    %21 = arith.cmpi eq, %19, %20 : vector<32x128xi32>
    %cst_4 = arith.constant 0.000000e+00 : f32
    %22 = vector.shape_cast %15 : vector<32x1xf32> to vector<32x1xf32>
    %23 = vector.broadcast %22 : vector<32x1xf32> to vector<32x128xf32>
    %24 = vector.broadcast %cst_4 : f32 to vector<32x128xf32>
    %25 = arith.select %21, %23, %24 : vector<32x128xi1>, vector<32x128xf32>
    %26 = arith.addf %11, %25 : vector<32x128xf32>
    %c0_5 = arith.constant 0 : index
    %c0_6 = arith.constant 0 : index
    %27 = vector.load %arg4[%c0_5, %c0_6] : memref<32x128xf32, #tpu.memory_space<vmem>>, vector<32x128xf32>
    tpu.vector_store %arg4[%c0_5, %c0_6], %26 {strides = array<i32>} : memref<32x128xf32, #tpu.memory_space<vmem>>, vector<32x128xf32>,
    return
  }
  func.func @transform_0(%arg0: i32, %arg1: i32) -> (i32, i32) {
    %c0_i32 = arith.constant 0 : i32
    %c0_i32_0 = arith.constant 0 : i32
    return %arg1, %c0_i32 : i32, i32
  }
  func.func @transform_1(%arg0: i32, %arg1: i32) -> (i32, i32) {
    %c0_i32 = arith.constant 0 : i32
    %c0_i32_0 = arith.constant 0 : i32
    return %c0_i32, %arg0 : i32, i32
  }
  func.func @transform_2(%arg0: i32, %arg1: i32) -> (i32, i32) {
    %c0_i32 = arith.constant 0 : i32
    return %arg1, %arg0 : i32, i32
  }
}

</mosaic_0001>

<bundles_post_ra>
// kernel: tpu_custom_call.1
= control target key start
LH: loop header
LB: loop body
LE: loop exit
PB: predicated region body
PF: predicated region fallthrough
CT: control target
= control target key end

     0   :  { %v222_v2 = vmov 0   ;;  %s268_s0 = inlined_call_operand.vmem [shape: s32[32,3], index: 0, kind: input, shape index: {}]   ;;  %s269_s1 = inlined_call_operand.vmem [shape: f32[8,128], index: 1, kind: input, shape index: {}]   ;;  %s270_s2 = inlined_call_operand.hbm [shape: f32[32,128], index: 2, kind: output, shape index: {}]  }
   0x1   :  { %v247_v0 = vld [vmem:[%s268_s0 + $0x10] sm:$0xff]  ;;  %v12_v1 = vld [vmem:[%s268_s0] sm:$0xff]  ;;  %192 = vset.pattern.permute.xlu1 %v222_v2  ;;  %191 = vset.pattern.permute.xlu0 %v222_v2 }
   0x2   :  { %7 = vsyncpa [#allocation3], 0  ;;  %25 = vperm.xlu0 %191, %v247_v0   ;;  %19 = vperm.xlu1 %192, %v12_v1   ;;  %s223_s13 = smov 127   ;;  %v15_v3 = vld [vmem:[%s268_s0 + $0x18] sm:$0xff]  ;;  %v13_v4 = vld [vmem:[%s268_s0 + $0x8] sm:$0xff]  ;;  %v224_v5 = vmov 1   ;;  %v16_v11 = vlaneseq }
   0x3   :  { %47 = vrot.lane.b32.xlu2 %v12_v1, %s223_s13  ;;  %v42_v6 = vld [vmem:[%s269_s1] sm:$0xff]  ;;  %vm43_vm0 = vcmp.ne.s32.totalorder %v12_v1, 0  ;;  %vm44_vm1 = vcmp.ne.s32.totalorder %v13_v4, 0  ;;  %vm109_vm2 = vcmask 64512   ;;  %v225_v15 = vmov 0.0   ;;  %s226_s0 = smov [#allocation2]  }
   0x4   :  { %137 = vmatpush.msra.mxu0 %v42_v6  ;;  %182 = vmatpush.msra.mxu2 %v42_v6  ;;  %v17_v12 = vand.u32 127, %v16_v11  ;;  %vm45_vm7 = vcmp.ne.s32.totalorder %v247_v0, 0  ;;  %vm46_vm8 = vcmp.ne.s32.totalorder %v15_v3, 0  ;;  %s159_s1 = sshll.u32 %s226_s0, 4  ;;  %s161_s22 = sshll.u32 %s270_s2, 4  ;;  %s160_s1 = int_to_ptr.vmem [resolvable:$true] %s159_s1  ;;  %s162_s22 = int_to_ptr.hbm [resolvable:$true] %s161_s22 }
   0x5   :  { %181 = vmatpush.msra.mxu1 %v42_v6  ;;  %183 = vmatpush.msra.mxu3 %v42_v6  ;;  %s227_s23 = smov 128   ;;  %s228_s24 = smov 8  }
   0x6   :  { %193 = vset.pattern.permute.xlu2 %v224_v5 }
   0xa   :  { %28 = vperm.xlu0 %191, %v15_v3   ;;  %22 = vperm.xlu1 %192, %v13_v4  }
   0xb   :  { %49 = vrot.lane.b32.xlu2 %v13_v4, %s223_s13 }
  0x12   :  { %51 = vrot.lane.b32.xlu0 %v247_v0, %s223_s13  ;;  %53 = vrot.lane.b32.xlu1 %v15_v3, %s223_s13 }
  0x13   :  { %195 = vset.pattern.permute.xlu1 %v224_v5  ;;  %194 = vset.pattern.permute.xlu0 %v224_v5 }
  0x14   :  { %70 = vperm.xlu2 %193, %v12_v1  }
  0x1a   :  { %76 = vperm.xlu1 %195, %v247_v0   ;;  %73 = vperm.xlu0 %194, %v13_v4  }
  0x1c   :  { %79 = vperm.xlu2 %193, %v15_v3  }
  0x5d   :  { %v48_v7 = vpop.permute.xlu2 %47 }
  0x5e   :  { %v59_v8 = vsel %vm43_vm0, %v48_v7, 0.0 }
  0x5f   :  { %87 = vperm.xlu1 %195, %v59_v8  }
  0x65   :  { %v50_v9 = vpop.permute.xlu2 %49 }
  0x66   :  { %v60_v10 = vsel %vm44_vm1, %v50_v9, 0.0 }
  0x67   :  { %92 = vperm.xlu2 %193, %v60_v10  }
  0x6e   :  { %v71_v26 = vpop.permute.xlu2 %70 }
  0x6f   :  { %vm81_vm9 = vcmp.eq.s32.totalorder %v17_v12, %v71_v26 }
  0x74   :  { %v26_v13 = vpop.permute.xlu0 %25  ;;  %v20_v14 = vpop.permute.xlu1 %19 }
  0x75   :  { %vm32_vm3 = vcmp.eq.s32.totalorder %v17_v12, %v26_v13  ;;  %vm30_vm4 = vcmp.eq.s32.totalorder %v17_v12, %v20_v14 }
  0x76   :  { %v175_v16 = vsel %vm32_vm3, 1.0, %v225_v15  ;;  %v173_v17 = vsel %vm30_vm4, 1.0, %v225_v15  ;;  %v80_v29 = vpop.permute.xlu2 %79 }
  0x77   :  { %177 = vmatmul.msk.f32.vlgmr.msra.gmra.mxu0 %vm109_vm2, %v173_v17  ;;  %179 = vmatmul.msk.f32.vlgmr.msra.gmra.mxu2 %vm109_vm2, %v175_v16  ;;  %vm84_vm12 = vcmp.eq.s32.totalorder %v17_v12, %v80_v29 }
  0x7c   :  { %v29_v18 = vpop.permute.xlu0 %28  ;;  %v23_v19 = vpop.permute.xlu1 %22 }
  0x7d   :  { %vm33_vm5 = vcmp.eq.s32.totalorder %v17_v12, %v29_v18  ;;  %vm31_vm6 = vcmp.eq.s32.totalorder %v17_v12, %v23_v19 }
  0x7e   :  { %v176_v20 = vsel %vm33_vm5, 1.0, %v225_v15  ;;  %v174_v21 = vsel %vm31_vm6, 1.0, %v225_v15 }
  0x7f   :  { %178 = vmatmul.msk.f32.vlgmr.msra.gmra.mxu1 %vm109_vm2, %v174_v21  ;;  %180 = vmatmul.msk.f32.vlgmr.msra.gmra.mxu3 %vm109_vm2, %v176_v20 }
  0x84   :  { %v52_v22 = vpop.permute.xlu0 %51  ;;  %v54_v23 = vpop.permute.xlu1 %53 }
  0x85   :  { %v61_v24 = vsel %vm45_vm7, %v52_v22, 0.0  ;;  %v62_v25 = vsel %vm46_vm8, %v54_v23, 0.0 }
  0x86   :  { %97 = vperm.xlu0 %194, %v61_v24   ;;  %102 = vperm.xlu1 %195, %v62_v25  }
  0x8c   :  { %v77_v27 = vpop.permute.xlu1 %76  ;;  %v74_v28 = vpop.permute.xlu0 %73 }
  0x8d   :  { %vm83_vm10 = vcmp.eq.s32.totalorder %v17_v12, %v77_v27  ;;  %vm82_vm11 = vcmp.eq.s32.totalorder %v17_v12, %v74_v28 }
  0xc1   :  { %v93_v35 = vpop.permute.xlu2 %92 }
  0xc2   :  { %v106_v39 = vsel %vm82_vm11, %v93_v35, 0.0 }
  0xd1   :  { %v88_v30 = vpop.permute.xlu1 %87 }
  0xd2   :  { %v105_v31 = vsel %vm81_vm9, %v88_v30, 0.0 }
  0xf4   :  { %v139_v32 = vpop.f32.mrf.mxu0 }
  0xf5   :  { %v140_v33 = vadd.f32 %v139_v32, %v105_v31 }
  0xf7   :  { %151 = vst [vmem:[#allocation2] sm:$0xff] %v140_v33 }
  0xf8   :  { %v98_v34 = vpop.permute.xlu0 %97  ;;  %v103_v42 = vpop.permute.xlu1 %102 }
  0xf9   :  { %v107_v36 = vsel %vm83_vm10, %v98_v34, 0.0  ;;  %v108_v43 = vsel %vm84_vm12, %v103_v42, 0.0 }
  0xfa   :  { %v145_v37 = vpop.f32.mrf.mxu2 }
  0xfb   :  { %v146_v38 = vadd.f32 %v145_v37, %v107_v36 }
  0xfc   :  { %v142_v40 = vpop.f32.mrf.mxu1 }
  0xfd   :  { %153 = vst [vmem:[#allocation2 + $0x10] sm:$0xff] %v146_v38  ;;  %v143_v41 = vadd.f32 %v142_v40, %v106_v39 }
  0xff   :  { %152 = vst [vmem:[#allocation2 + $0x8] sm:$0xff] %v143_v41 }
 0x102   :  { %v148_v44 = vpop.f32.mrf.mxu3 }
 0x103   :  { %v149_v45 = vadd.f32 %v148_v44, %v108_v43 }
 0x105   :  { %154 = vst [vmem:[#allocation2 + $0x18] sm:$0xff] %v149_v45 }
 0x106   :  { %167 = dma.vmem_to_hbm [thread:$0]  %s160_s1, 512, %s162_s22, [#allocation3], %s227_s23, %s227_s23, %s228_s24  }
 0x107   :  { %220 = dma.done.wait [#allocation3], 512  }
 0x108   :  { %221 = vsyncadd [#allocation3], 4294966784 }
 0x109   :  { %172 = vsyncpa [#allocation3], 1 }

</bundles_post_ra>
